<compile_context>
chip_gen: v5e
topology: v5e:2x2
jax: 0.10.0
libtpu: 0.0.40
codegen_flags: <defaults>
</compile_context>

<pallas_src>
import functools
import math

import jax
import jax.numpy as jnp
from jax import lax
from jax.experimental import pallas as pl
from jax.experimental.pallas import tpu as pltpu


def _round_up(x, m):
    return ((x + m - 1) // m) * m


def _vmem_budget_bytes():
    """VMEM budget for tile planning / vmem_limit_bytes.

    The conservative default (48 MiB) is safe on every generation (v7x has
    only 64 MiB per TensorCore).  It is raised only on a *positive* v5e/v6e
    chip-version identification -- a raw capacity threshold could misread
    v7x (2 TC x 64 MiB reported per chip) as a 128 MiB part.
    """
    budget = 48 * 1024 * 1024
    try:
        info = pltpu.get_tpu_info()
        ver = ""
        for attr in ("chip_version", "version", "chip_name", "name"):
            v = getattr(info, attr, None)
            if v is not None:
                ver += " " + str(v)
        ver = ver.lower()
        if any(tag in ver for tag in ("v5e", "v6e", "v5lite", "v6lite", "5e", "6e")):
            budget = 96 * 1024 * 1024
    except Exception:
        pass
    return budget


def _plan(M0, D0, dtype):
    """Pick a tiling plan for out = (x @ W^T + b)*mf + x*inf, W of shape (D, D)."""
    itemsize = jnp.dtype(dtype).itemsize
    budget = _vmem_budget_bytes()

    # Sub-32-bit dtypes pack along sublanes: keep the sublane tile native.
    sub = 8 if itemsize >= 4 else (16 if itemsize == 2 else 32)

    Dp = _round_up(D0, 128)
    tn = next(c for c in (512, 256, 128) if Dp % c == 0)

    # v7x megacore: guarantee >= 2 'parallel' grid steps for decode-like
    # shapes so both TensorCores get work.
    tm_nom = min(512, _round_up(M0, sub))
    if (_round_up(M0, tm_nom) // tm_nom) * (Dp // tn) < 2 and Dp % 256 == 0:
        tn = max(128, Dp // 2)

    # Variant A: weight-stationary.  Full-K x and W slabs live in VMEM; the
    # grid is (N-blocks outer, M-blocks inner) so the (tn, Dp) weight slab has
    # a constant block index across the inner axis and is DMAed from HBM once.
    for tm_cap in (512, 256):
        tm = min(tm_cap, _round_up(M0, sub))
        Mp = _round_up(M0, tm)
        footprint = 2 * (tm * Dp          # x slab (double buffered)
                         + tn * Dp        # weight slab
                         + 2 * tm * tn    # residual view + output tile
                         + tn) * itemsize
        if footprint <= (budget * 85) // 100:
            return dict(variant="kresident", tm=tm, tn=tn, tk=Dp,
                        Mp=Mp, Dp=Dp, vmem_limit=budget)

    # Variant B: K-tiled with f32 accumulator.  tn == tk so the x matmul tile
    # at k == j is exactly the (i, j) residual tile (snapshot dedup).
    tm = min(1024, _round_up(M0, sub))
    Mp = _round_up(M0, tm)
    return dict(variant="ktiled", tm=tm, tn=tn, tk=tn,
                Mp=Mp, Dp=Dp, vmem_limit=budget)


def _kresident_kernel(x_ref, w_ref, b_ref, res_ref, o_ref, *,
                      module_factor, input_factor):
    # x_ref:   (tm, Dp)  input rows, full K
    # w_ref:   (tn, Dp)  weight slab, PyTorch (out, in) layout -> contract dim 1
    # b_ref:   (1, tn)   bias tile
    # res_ref: (tm, tn)  residual view of the same x array
    # o_ref:   (tm, tn)  output tile
    acc = lax.dot_general(
        x_ref[...], w_ref[...],
        dimension_numbers=(((1,), (1,)), ((), ())),
        preferred_element_type=jnp.float32)
    acc = (acc + b_ref[...].astype(jnp.float32)) * module_factor
    acc = acc + res_ref[...].astype(jnp.float32) * input_factor
    o_ref[...] = acc.astype(o_ref.dtype)


def _ktiled_kernel(x_ref, w_ref, b_ref, o_ref, acc_ref, res_ref, *,
                   module_factor, input_factor):
    # x_ref: (tm, tk); w_ref: (tn, tk) PyTorch layout; b_ref: (1, tn)
    # o_ref: (tm, tn); acc_ref: (tm, tn) f32 scratch; res_ref: (tm, tn) x.dtype
    j = pl.program_id(1)
    k = pl.program_id(2)

    @pl.when(k == 0)
    def _():
        # Fold the bias into the accumulator init (saves a finalize add).
        acc_ref[...] = jnp.broadcast_to(
            b_ref[...].astype(jnp.float32), acc_ref.shape)

    # tn == tk, so the x tile at k == j is exactly the (i, j) residual tile:
    # snapshot it and drop the separate residual HBM stream entirely.
    @pl.when(k == j)
    def _():
        res_ref[...] = x_ref[...]

    acc_ref[...] += lax.dot_general(
        x_ref[...], w_ref[...],
        dimension_numbers=(((1,), (1,)), ((), ())),
        preferred_element_type=jnp.float32)

    @pl.when(k == pl.num_programs(2) - 1)
    def _():
        y = (acc_ref[...] * module_factor
             + res_ref[...].astype(jnp.float32) * input_factor)
        o_ref[...] = y.astype(o_ref.dtype)


def residual_linear(x, weight, bias=None, *, module_factor=1.0, input_factor=1.0):
    """ResidualConnectionModule(nn.Linear(d, d)).forward.

    x:      (..., d)
    weight: (d, d)  -- PyTorch (out_features, in_features) layout
    bias:   (d,) or None
    returns (..., d) = (x @ W^T + b) * module_factor + x * input_factor
    """
    *lead, D0 = x.shape
    N0, K0 = weight.shape
    assert K0 == D0, "weight must be (out_features, in_features)"
    assert N0 == D0, "residual add requires in_features == out_features"

    M0 = 1
    for d in lead:
        M0 *= d
    M0 = max(M0, 1)

    module_factor = float(module_factor)
    input_factor = float(input_factor)

    plan = _plan(M0, D0, x.dtype)
    tm, tn, Mp, Dp = plan["tm"], plan["tn"], plan["Mp"], plan["Dp"]
    itemsize = jnp.dtype(x.dtype).itemsize

    x2d = x.reshape(M0, D0)
    # Conditional padding: no extra HBM round trips for already-aligned shapes.
    # K-padding is zero-filled, so the padded reduction stays exact.
    x_p = x2d if (Mp == M0 and Dp == D0) else jnp.pad(
        x2d, ((0, Mp - M0), (0, Dp - D0)))
    w_p = weight if Dp == D0 else jnp.pad(
        weight, ((0, Dp - D0), (0, Dp - D0)))
    if bias is None:
        b_p = jnp.zeros((1, Dp), dtype=x.dtype)
    else:
        b1 = bias if Dp == D0 else jnp.pad(bias, (0, Dp - D0))
        b_p = b1.reshape(1, Dp)

    if plan["variant"] == "kresident":
        kernel = functools.partial(
            _kresident_kernel,
            module_factor=module_factor, input_factor=input_factor)
        grid = (Dp // tn, Mp // tm)   # j outer, i inner -> weight slab resident
        cost = pl.CostEstimate(
            flops=2 * Mp * Dp * Dp,
            transcendentals=0,
            bytes_accessed=(Dp * Dp                      # weight, read once
                            + (Dp // tn) * Mp * Dp       # x, re-streamed per j
                            + Mp * Dp                    # residual view of x
                            + Mp * Dp                    # output
                            + Dp) * itemsize)
        out = pl.pallas_call(
            kernel,
            out_shape=jax.ShapeDtypeStruct((Mp, Dp), x.dtype),
            grid_spec=pltpu.PrefetchScalarGridSpec(
                num_scalar_prefetch=0,
                grid=grid,
                in_specs=[
                    pl.BlockSpec((tm, Dp), lambda j, i: (i, 0)),   # x (full K)
                    pl.BlockSpec((tn, Dp), lambda j, i: (j, 0)),   # W slab (resident)
                    pl.BlockSpec((1, tn), lambda j, i: (0, j)),    # bias
                    pl.BlockSpec((tm, tn), lambda j, i: (i, j)),   # residual = x view
                ],
                out_specs=pl.BlockSpec((tm, tn), lambda j, i: (i, j)),
            ),
            compiler_params=pltpu.CompilerParams(
                dimension_semantics=("parallel", "parallel"),
                vmem_limit_bytes=plan["vmem_limit"]),
            cost_estimate=cost,
        )(x_p, w_p, b_p, x_p)  # x passed twice: matmul operand + residual view
    else:
        tk = plan["tk"]
        kernel = functools.partial(
            _ktiled_kernel,
            module_factor=module_factor, input_factor=input_factor)
        grid = (Mp // tm, Dp // tn, Dp // tk)
        cost = pl.CostEstimate(
            flops=2 * Mp * Dp * Dp,
            transcendentals=0,
            bytes_accessed=((Dp // tn) * Mp * Dp         # x, re-streamed per j
                            + (Mp // tm) * Dp * Dp       # W, re-streamed per i
                            + Mp * Dp                    # output
                            + Dp) * itemsize)
        out = pl.pallas_call(
            kernel,
            out_shape=jax.ShapeDtypeStruct((Mp, Dp), x.dtype),
            grid_spec=pltpu.PrefetchScalarGridSpec(
                num_scalar_prefetch=0,
                grid=grid,
                in_specs=[
                    pl.BlockSpec((tm, tk), lambda i, j, k: (i, k)),   # x
                    pl.BlockSpec((tn, tk), lambda i, j, k: (j, k)),   # W (N, K)
                    pl.BlockSpec((1, tn), lambda i, j, k: (0, j)),    # bias
                ],
                out_specs=pl.BlockSpec((tm, tn), lambda i, j, k: (i, j)),
                scratch_shapes=[pltpu.VMEM((tm, tn), jnp.float32),
                                pltpu.VMEM((tm, tn), x.dtype)],
            ),
            compiler_params=pltpu.CompilerParams(
                dimension_semantics=("parallel", "parallel", "arbitrary"),
                vmem_limit_bytes=plan["vmem_limit"]),
            cost_estimate=cost,
        )(x_p, w_p, b_p)

    out2d = out if (Mp == M0 and Dp == D0) else out[:M0, :D0]
    return out2d.reshape(*lead, D0)


def init_linear_params(key, in_features, out_features, bias=True, dtype=jnp.float32):
    """Xavier-uniform weight (PyTorch shape (out, in)), zero bias."""
    bound = math.sqrt(6.0 / (in_features + out_features))
    w = jax.random.uniform(
        key, (out_features, in_features), dtype=dtype, minval=-bound, maxval=bound)
    b = jnp.zeros((out_features,), dtype=dtype) if bias else None
    return w, b


if __name__ == "__main__":
    key = jax.random.PRNGKey(0)
    k_x, k_w = jax.random.split(key)

    batch, seq, hidden = 2, 8, 32
    module_factor, input_factor = 0.5, 1.0

    x = jax.random.normal(k_x, (batch, seq, hidden), dtype=jnp.float32)
    weight, bias = init_linear_params(k_w, hidden, hidden, bias=True)

    y = residual_linear(x, weight, bias,
                        module_factor=module_factor, input_factor=input_factor)
    y = jax.block_until_ready(y)

    # sanity check against plain-JAX reference of the PyTorch forward
    y_ref = (x @ weight.T + bias) * module_factor + x * input_factor
    assert y.shape == (batch, seq, hidden)
    assert jnp.allclose(y, y_ref, atol=1e-5, rtol=1e-5)

    print("KERNEL_OK")
</pallas_src>

<mosaic_0001>
module attributes {stable_mosaic.version = 11 : i64} {
  func.func @_kresident_kernel(%arg0: i32, %arg1: i32, %arg2: memref<16x128xf32, #tpu.memory_space<vmem>>, %arg3: memref<128x128xf32, #tpu.memory_space<vmem>>, %arg4: memref<1x128xf32, #tpu.memory_space<vmem>>, %arg5: memref<16x128xf32, #tpu.memory_space<vmem>>, %arg6: memref<16x128xf32, #tpu.memory_space<vmem>>) attributes {dimension_semantics = [#tpu.dimension_semantics<parallel>, #tpu.dimension_semantics<parallel>], iteration_bounds = array<i64: 1, 1>, scalar_prefetch = 0 : i64, scratch_operands = 0 : i64, tpu.core_type = #tpu.core_type<tc>, window_params = [{transform_indices = @transform_0, window_bounds = array<i64: 16, 128>}, {transform_indices = @transform_1, window_bounds = array<i64: 128, 128>}, {transform_indices = @transform_2, window_bounds = array<i64: 1, 128>}, {transform_indices = @transform_3, window_bounds = array<i64: 16, 128>}, {transform_indices = @transform_4, window_bounds = array<i64: 16, 128>}]} {
    %c0 = arith.constant 0 : index
    %c0_0 = arith.constant 0 : index
    %0 = vector.load %arg2[%c0, %c0_0] : memref<16x128xf32, #tpu.memory_space<vmem>>, vector<16x128xf32>
    %c0_1 = arith.constant 0 : index
    %c0_2 = arith.constant 0 : index
    %1 = vector.load %arg3[%c0_1, %c0_2] : memref<128x128xf32, #tpu.memory_space<vmem>>, vector<128x128xf32>
    %cst = arith.constant dense<0.000000e+00> : vector<16x128xf32>
    %2 = tpu.matmul %0, %1, %cst {dimension_numbers = #tpu.dot_dimension_numbers<[1], [1], [0], [0], [0, 0, 1, 0], [], []>} : vector<16x128xf32>, vector<128x128xf32>, vector<16x128xf32> -> vector<16x128xf32>
    %c0_3 = arith.constant 0 : index
    %c0_4 = arith.constant 0 : index
    %3 = vector.load %arg4[%c0_3, %c0_4] : memref<1x128xf32, #tpu.memory_space<vmem>>, vector<1x128xf32>
    %4 = vector.broadcast %3 : vector<1x128xf32> to vector<16x128xf32>
    %5 = arith.addf %2, %4 : vector<16x128xf32>
    %cst_5 = arith.constant 5.000000e-01 : f32
    %6 = vector.broadcast %cst_5 : f32 to vector<16x128xf32>
    %7 = arith.mulf %5, %6 : vector<16x128xf32>
    %c0_6 = arith.constant 0 : index
    %c0_7 = arith.constant 0 : index
    %8 = vector.load %arg5[%c0_6, %c0_7] : memref<16x128xf32, #tpu.memory_space<vmem>>, vector<16x128xf32>
    %cst_8 = arith.constant 1.000000e+00 : f32
    %9 = vector.broadcast %cst_8 : f32 to vector<16x128xf32>
    %10 = arith.mulf %8, %9 : vector<16x128xf32>
    %11 = arith.addf %7, %10 : vector<16x128xf32>
    %c0_9 = arith.constant 0 : index
    %c0_10 = arith.constant 0 : index
    %12 = vector.load %arg6[%c0_9, %c0_10] : memref<16x128xf32, #tpu.memory_space<vmem>>, vector<16x128xf32>
    tpu.vector_store %arg6[%c0_9, %c0_10], %11 {strides = array<i32>} : memref<16x128xf32, #tpu.memory_space<vmem>>, vector<16x128xf32>,
    return
  }
  func.func @transform_0(%arg0: i32, %arg1: i32) -> (i32, i32) {
    %c0_i32 = arith.constant 0 : i32
    %c0_i32_0 = arith.constant 0 : i32
    return %arg1, %c0_i32 : i32, i32
  }
  func.func @transform_1(%arg0: i32, %arg1: i32) -> (i32, i32) {
    %c0_i32 = arith.constant 0 : i32
    %c0_i32_0 = arith.constant 0 : i32
    return %arg0, %c0_i32 : i32, i32
  }
  func.func @transform_2(%arg0: i32, %arg1: i32) -> (i32, i32) {
    %c0_i32 = arith.constant 0 : i32
    %c0_i32_0 = arith.constant 0 : i32
    return %c0_i32, %arg0 : i32, i32
  }
  func.func @transform_3(%arg0: i32, %arg1: i32) -> (i32, i32) {
    %c0_i32 = arith.constant 0 : i32
    return %arg1, %arg0 : i32, i32
  }
  func.func @transform_4(%arg0: i32, %arg1: i32) -> (i32, i32) {
    %c0_i32 = arith.constant 0 : i32
    return %arg1, %arg0 : i32, i32
  }
}

</mosaic_0001>

<bundles_post_ra>
// kernel: tpu_custom_call.1
= control target key start
LH: loop header
LB: loop body
LE: loop exit
PB: predicated region body
PF: predicated region fallthrough
CT: control target
= control target key end

     0   :  { %9 = vsyncpa [#allocation3], 0  ;;  %s321_s0 = inlined_call_operand.hbm [shape: f32[16,128], index: 0, kind: input, shape index: {}]   ;;  %s322_s1 = inlined_call_operand.hbm [shape: f32[128,128], index: 1, kind: input, shape index: {}]   ;;  %s323_s2 = inlined_call_operand.vmem [shape: f32[1,128], index: 2, kind: input, shape index: {}]   ;;  %s324_s3 = inlined_call_operand.hbm [shape: f32[16,128], index: 3, kind: input, shape index: {}]   ;;  %s325_s4 = inlined_call_operand.hbm [shape: f32[16,128], index: 4, kind: output, shape index: {}]  }
   0x1   :  { %10 = vsyncpa [#allocation6], 0 }
   0x2   :  { %11 = vsyncpa [#allocation4], 0  ;;  %s29_s17 = sshll.u32 %s322_s1, 4  ;;  %s263_s18 = smov [#allocation5]   ;;  %s30_s17 = int_to_ptr.hbm [resolvable:$true] %s29_s17 }
   0x3   :  { %s31_s19 = sshll.u32 %s263_s18, 4  ;;  %s16_s22 = sshll.u32 %s321_s0, 4  ;;  %s32_s19 = int_to_ptr.vmem [resolvable:$true] %s31_s19  ;;  %s17_s22 = int_to_ptr.hbm [resolvable:$true] %s16_s22 }
   0x4   :  { %s264_s23 = smov 128   ;;  %s265_s24 = smov 8  }
   0x5   :  { %37 = dma.hbm_to_vmem [thread:$0]  %s30_s17, 2048, %s32_s19, [#allocation6], %s264_s23, %s264_s23, %s265_s24  }
   0x6   :  { %s266_s25 = smov [#allocation2]   ;;  %s44_s1 = sshll.u32 %s324_s3, 4  ;;  %s45_s1 = int_to_ptr.hbm [resolvable:$true] %s44_s1 }
   0x7   :  { %s18_s26 = sshll.u32 %s266_s25, 4  ;;  %s267_s0 = smov [#allocation7]   ;;  %s19_s26 = int_to_ptr.vmem [resolvable:$true] %s18_s26 }
   0x8   :  { %24 = dma.hbm_to_vmem [thread:$0]  %s17_s22, 256, %s19_s26, [#allocation3], %s264_s23, %s264_s23, %s265_s24  }
   0x9   :  { %s46_s29 = sshll.u32 %s267_s0, 4  ;;  %s47_s29 = int_to_ptr.vmem [resolvable:$true] %s46_s29 }
   0xa   :  { %52 = dma.hbm_to_vmem [thread:$0]  %s45_s1, 256, %s47_s29, [#allocation6], %s264_s23, %s264_s23, %s265_s24  }
   0xb   :  { %257 = dma.done.wait [#allocation3], 256  }
   0xc   :  { %258 = vsyncadd [#allocation3], 4294967040 }
   0xd   :  { %259 = dma.done.wait [#allocation6], 2304  }
   0xe   :  { %260 = vsyncadd [#allocation6], 4294964992  ;;  %v82_v0 = vld [vmem:[#allocation5 + $0x78] sm:$0xff]  ;;  %v81_v1 = vld [vmem:[#allocation5 + $0x70] sm:$0xff]  ;;  %s268_s5 = smov [#allocation8]   ;;  %s124_s9 = sshll.u32 %s325_s4, 4  ;;  %s125_s9 = int_to_ptr.hbm [resolvable:$true] %s124_s9 }
   0xf   :  { %87 = vmatpush.xpose.msra.mxu0 %v82_v0  ;;  %138 = vmatpush.xpose.msra.mxu1 %v82_v0  ;;  %v80_v2 = vld [vmem:[#allocation5 + $0x68] sm:$0xff]  ;;  %v79_v3 = vld [vmem:[#allocation5 + $0x60] sm:$0xff]  ;;  %v78_v4 = vld [vmem:[#allocation5 + $0x58] sm:$0xff]  ;;  %s122_s6 = sshll.u32 %s268_s5, 4  ;;  %s123_s6 = int_to_ptr.vmem [resolvable:$true] %s122_s6 }
  0x10   :  { %v77_v5 = vld [vmem:[#allocation5 + $0x50] sm:$0xff]  ;;  %v76_v6 = vld [vmem:[#allocation5 + $0x48] sm:$0xff]  ;;  %v75_v7 = vld [vmem:[#allocation5 + $0x40] sm:$0xff] }
  0x11   :  { %v74_v8 = vld [vmem:[#allocation5 + $0x38] sm:$0xff]  ;;  %v73_v9 = vld [vmem:[#allocation5 + $0x30] sm:$0xff]  ;;  %v72_v10 = vld [vmem:[#allocation5 + $0x28] sm:$0xff] }
  0x12   :  { %v71_v11 = vld [vmem:[#allocation5 + $0x20] sm:$0xff]  ;;  %v70_v12 = vld [vmem:[#allocation5 + $0x18] sm:$0xff]  ;;  %v69_v13 = vld [vmem:[#allocation5 + $0x10] sm:$0xff] }
  0x13   :  { %88 = vmatpush.xpose.msra.mxu0 %v81_v1  ;;  %139 = vmatpush.xpose.msra.mxu1 %v81_v1  ;;  %v68_v14 = vld [vmem:[#allocation5 + $0x8] sm:$0xff]  ;;  %v67_v15 = vld [vmem:[#allocation5] sm:$0xff]  ;;  %v65_v16 = vld [vmem:[#allocation2] sm:$0xff] }
  0x14   :  { %v66_v17 = vld [vmem:[#allocation2 + $0x8] sm:$0xff]  ;;  %v160_v18 = vld [vmem:[%s323_s2] ss:$0 sm:$0xff]  ;;  %v112_v23 = vld [vmem:[#allocation7] sm:$0xff] }
  0x15   :  { %v113_v24 = vld [vmem:[#allocation7 + $0x8] sm:$0xff] }
  0x17   :  { %89 = vmatpush.xpose.msra.mxu0 %v80_v2  ;;  %140 = vmatpush.xpose.msra.mxu1 %v80_v2 }
  0x1b   :  { %90 = vmatpush.xpose.msra.mxu0 %v79_v3  ;;  %141 = vmatpush.xpose.msra.mxu1 %v79_v3 }
  0x1f   :  { %91 = vmatpush.xpose.msra.mxu0 %v78_v4  ;;  %142 = vmatpush.xpose.msra.mxu1 %v78_v4 }
  0x23   :  { %92 = vmatpush.xpose.msra.mxu0 %v77_v5  ;;  %143 = vmatpush.xpose.msra.mxu1 %v77_v5 }
  0x27   :  { %93 = vmatpush.xpose.msra.mxu0 %v76_v6  ;;  %144 = vmatpush.xpose.msra.mxu1 %v76_v6 }
  0x2b   :  { %94 = vmatpush.xpose.msra.mxu0 %v75_v7  ;;  %145 = vmatpush.xpose.msra.mxu1 %v75_v7 }
  0x2f   :  { %95 = vmatpush.xpose.msra.mxu0 %v74_v8  ;;  %146 = vmatpush.xpose.msra.mxu1 %v74_v8 }
  0x33   :  { %96 = vmatpush.xpose.msra.mxu0 %v73_v9  ;;  %147 = vmatpush.xpose.msra.mxu1 %v73_v9 }
  0x37   :  { %97 = vmatpush.xpose.msra.mxu0 %v72_v10  ;;  %148 = vmatpush.xpose.msra.mxu1 %v72_v10 }
  0x3b   :  { %98 = vmatpush.xpose.msra.mxu0 %v71_v11  ;;  %149 = vmatpush.xpose.msra.mxu1 %v71_v11 }
  0x3f   :  { %99 = vmatpush.xpose.msra.mxu0 %v70_v12  ;;  %150 = vmatpush.xpose.msra.mxu1 %v70_v12 }
  0x43   :  { %100 = vmatpush.xpose.msra.mxu0 %v69_v13  ;;  %151 = vmatpush.xpose.msra.mxu1 %v69_v13 }
  0x47   :  { %101 = vmatpush.xpose.msra.mxu0 %v68_v14  ;;  %152 = vmatpush.xpose.msra.mxu1 %v68_v14 }
  0x4b   :  { %102 = vmatpush.xpose.msra.mxu0 %v67_v15  ;;  %153 = vmatpush.xpose.msra.mxu1 %v67_v15 }
  0x4e   :  { %103 = vmatmul.f32.vlgmr.msra.gmra.mxu0 %v65_v16  ;;  %106 = vmatmul.f32.vlgmr.msra.gmra.mxu1 %v66_v17 }
  0xcb   :  { %v104_v19 = vpop.f32.mrf.mxu0  ;;  %v107_v20 = vpop.f32.mrf.mxu1 }
  0xcc   :  { %v105_v21 = vadd.f32 %v160_v18, %v104_v19  ;;  %v108_v22 = vadd.f32 %v160_v18, %v107_v20 }
  0xce   :  { %v110_v25 = vmul.f32 0.5, %v105_v21  ;;  %v111_v26 = vmul.f32 0.5, %v108_v22 }
  0xd0   :  { %v114_v27 = vadd.f32 %v112_v23, %v110_v25  ;;  %v115_v28 = vadd.f32 %v113_v24, %v111_v26 }
  0xd2   :  { %116 = vst [vmem:[#allocation8] sm:$0xff] %v114_v27 }
  0xd3   :  { %117 = vst [vmem:[#allocation8 + $0x8] sm:$0xff] %v115_v28 }
  0xd4   :  { %130 = dma.vmem_to_hbm [thread:$0]  %s123_s6, 256, %s125_s9, [#allocation4], %s264_s23, %s264_s23, %s265_s24  }
  0xd5   :  { %261 = dma.done.wait [#allocation4], 256  }
  0xd6   :  { %262 = vsyncadd [#allocation4], 4294967040 }
  0xd7   :  { %135 = vsyncpa [#allocation3], 1 }
  0xd8   :  { %136 = vsyncpa [#allocation6], 1 }
  0xd9   :  { %137 = vsyncpa [#allocation4], 1 }

</bundles_post_ra>
